<compile_context>
chip_gen: v7x
topology: tpu7x:2x2x1
jax: 0.10.0
libtpu: 0.0.40
codegen_flags: <defaults>
</compile_context>

<pallas_src>
import jax
import jax.numpy as jnp
from jax.experimental import pallas as pl
from jax.experimental.pallas import tpu as pltpu


def _round_up(x, m):
    return -(-x // m) * m


def _dura_kernel(h_ref, r_ref, t_ref, o_ref):
    """Per-element DURA-RESCAL contributions for one batch tile.

    h_ref, t_ref, o_ref: (tb, 1, D);  r_ref: (tb, D, D).
    """
    h = h_ref[...]                      # (tb, 1, D), native dtype
    t = t_ref[...]                      # (tb, 1, D), native dtype
    r = r_ref[...]                      # (tb, D, D), native dtype (never upcast)

    hf = h.astype(jnp.float32)
    tf = t.astype(jnp.float32)

    # (r^T h)[b, k] = sum_d h[b, d] * r[b, d, k]   -> batched MXU matmul (M=1)
    rth = jnp.einsum('bqd,bdk->bqk', h, r,
                     preferred_element_type=jnp.float32)        # (tb, 1, D)
    # (r t)[b, d]   = sum_k t[b, k] * r[b, d, k]   -> batched MXU matmul (M=1)
    rt = jnp.einsum('bqk,bdk->bqd', t, r,
                    preferred_element_type=jnp.float32)         # (tb, 1, D)

    # Pure VPU elementwise; lane-dense (D on lanes) full-width store.
    o_ref[...] = hf * hf + tf * tf + rth * rth + rt * rt


def _pick_tb(B, D, itemsize, budget_bytes=8 << 20, cap=128):
    """Largest batch tile whose (tb, D, D) r block fits the per-buffer VMEM
    budget (accounting for (8, 128) tile padding of the trailing dims)."""
    r_row_bytes = _round_up(D, 8) * _round_up(D, 128) * itemsize
    tb = int(budget_bytes // max(r_row_bytes, 1))
    return max(1, min(tb, cap, B))


def dura_rescal_factor_norm(h, r, t):
    """Pallas-computed norm contribution of a single (h, r, t) factor."""
    B, D = h.shape
    assert r.shape == (B, D, D), r.shape
    assert t.shape == (B, D), t.shape

    itemsize = jnp.dtype(r.dtype).itemsize
    tb = _pick_tb(B, D, itemsize)
    grid = (pl.cdiv(B, tb),)

    # Present h / t as (B, 1, D) so block trailing dims are (1, D) == full dims.
    h3 = h[:, None, :]
    t3 = t[:, None, :]

    flops = 4 * B * D * D + 6 * B * D
    bytes_accessed = (B * D * D + 2 * B * D) * itemsize + B * D * 4

    contrib = pl.pallas_call(
        _dura_kernel,
        out_shape=jax.ShapeDtypeStruct((B, 1, D), jnp.float32),
        grid_spec=pltpu.PrefetchScalarGridSpec(
            num_scalar_prefetch=0,
            grid=grid,
            in_specs=[
                pl.BlockSpec((tb, 1, D), lambda i: (i, 0, 0)),
                pl.BlockSpec((tb, D, D), lambda i: (i, 0, 0)),
                pl.BlockSpec((tb, 1, D), lambda i: (i, 0, 0)),
            ],
            out_specs=pl.BlockSpec((tb, 1, D), lambda i: (i, 0, 0)),
        ),
        compiler_params=pltpu.CompilerParams(
            dimension_semantics=("parallel",),      # independent blocks -> megacore
            vmem_limit_bytes=32 * 1024 * 1024,      # above v5e's 16 MiB default
        ),
        cost_estimate=pl.CostEstimate(
            flops=int(flops),
            transcendentals=0,
            bytes_accessed=int(bytes_accessed),
        ),
    )(h3, r, t3)
    # Final scalar reduction of the tiny (B, 1, D) contribution map stays in XLA.
    return jnp.sum(contrib)


def dura_rescal(factors, weight):
    """JAX equivalent of DURA_RESCAL.forward(factors)."""
    norm = jnp.float32(0.0)
    last_b = None
    for (h, r, t) in factors:
        norm = norm + dura_rescal_factor_norm(h, r, t)
        last_b = h.shape[0]   # PyTorch divides by the *last* factor's batch size
    return jnp.float32(weight) * norm / jnp.float32(last_b)


def _dura_rescal_ref(factors, weight):
    """Pure-JAX reference for verification."""
    norm = 0.0
    last_b = None
    for (h, r, t) in factors:
        norm = norm + jnp.sum(h ** 2 + t ** 2)
        rth = jnp.einsum('bdk,bd->bk', r, h)
        rt = jnp.einsum('bdk,bk->bd', r, t)
        norm = norm + jnp.sum(rth ** 2 + rt ** 2)
        last_b = h.shape[0]
    return weight * norm / last_b


if __name__ == "__main__":
    key = jax.random.PRNGKey(0)
    B, D = 16, 32
    weight = 0.1

    factors = []
    for _ in range(2):   # two (h, r, t) factors
        key, kh, kr, kt = jax.random.split(key, 4)
        h = jax.random.normal(kh, (B, D), dtype=jnp.float32)
        r = jax.random.normal(kr, (B, D, D), dtype=jnp.float32)
        t = jax.random.normal(kt, (B, D), dtype=jnp.float32)
        factors.append((h, r, t))

    out = jax.block_until_ready(dura_rescal(factors, weight))
    ref = jax.block_until_ready(_dura_rescal_ref(factors, weight))

    # Tolerance accounts for MXU f32 matmul vs XLA reference rounding.
    assert jnp.allclose(out, ref, rtol=1e-3, atol=1e-2), (out, ref)

    print("KERNEL_OK")
</pallas_src>

<mosaic_0001>
module attributes {stable_mosaic.version = 11 : i64} {
  func.func @_dura_kernel(%arg0: i32, %arg1: memref<16x1x32xf32, #tpu.memory_space<vmem>>, %arg2: memref<16x32x32xf32, #tpu.memory_space<vmem>>, %arg3: memref<16x1x32xf32, #tpu.memory_space<vmem>>, %arg4: memref<16x1x32xf32, #tpu.memory_space<vmem>>) attributes {dimension_semantics = [#tpu.dimension_semantics<parallel>], iteration_bounds = array<i64: 1>, scalar_prefetch = 0 : i64, scratch_operands = 0 : i64, tpu.core_type = #tpu.core_type<tc>, window_params = [{transform_indices = @transform_0, window_bounds = array<i64: 16, 1, 32>}, {transform_indices = @transform_1, window_bounds = array<i64: 16, 32, 32>}, {transform_indices = @transform_2, window_bounds = array<i64: 16, 1, 32>}, {transform_indices = @transform_3, window_bounds = array<i64: 16, 1, 32>}]} {
    %c0 = arith.constant 0 : index
    %c0_0 = arith.constant 0 : index
    %c0_1 = arith.constant 0 : index
    %0 = vector.load %arg1[%c0, %c0_0, %c0_1] : memref<16x1x32xf32, #tpu.memory_space<vmem>>, vector<16x1x32xf32>
    %c0_2 = arith.constant 0 : index
    %c0_3 = arith.constant 0 : index
    %c0_4 = arith.constant 0 : index
    %1 = vector.load %arg3[%c0_2, %c0_3, %c0_4] : memref<16x1x32xf32, #tpu.memory_space<vmem>>, vector<16x1x32xf32>
    %c0_5 = arith.constant 0 : index
    %c0_6 = arith.constant 0 : index
    %c0_7 = arith.constant 0 : index
    %2 = vector.load %arg2[%c0_5, %c0_6, %c0_7] : memref<16x32x32xf32, #tpu.memory_space<vmem>>, vector<16x32x32xf32>
    "tpu.trace_start"() <{level = 10 : i32, message = "bqd,bdk->bqk"}> : () -> ()
    %cst = arith.constant dense<0.000000e+00> : vector<16x1x32xf32>
    %3 = tpu.matmul %0, %2, %cst {dimension_numbers = #tpu.dot_dimension_numbers<[2], [1], [1], [2], [0, 0, 0, 1, 1, 2], [0], [0]>} : vector<16x1x32xf32>, vector<16x32x32xf32>, vector<16x1x32xf32> -> vector<16x1x32xf32>
    "tpu.trace_stop"() : () -> ()
    "tpu.trace_start"() <{level = 10 : i32, message = "bqk,bdk->bqd"}> : () -> ()
    %cst_8 = arith.constant dense<0.000000e+00> : vector<16x1x32xf32>
    %4 = tpu.matmul %1, %2, %cst_8 {dimension_numbers = #tpu.dot_dimension_numbers<[2], [2], [1], [1], [0, 0, 0, 1, 1, 1], [0], [0]>} : vector<16x1x32xf32>, vector<16x32x32xf32>, vector<16x1x32xf32> -> vector<16x1x32xf32>
    "tpu.trace_stop"() : () -> ()
    %5 = arith.mulf %0, %0 : vector<16x1x32xf32>
    %6 = arith.mulf %1, %1 : vector<16x1x32xf32>
    %7 = arith.addf %5, %6 : vector<16x1x32xf32>
    %8 = arith.mulf %3, %3 : vector<16x1x32xf32>
    %9 = arith.addf %7, %8 : vector<16x1x32xf32>
    %10 = arith.mulf %4, %4 : vector<16x1x32xf32>
    %11 = arith.addf %9, %10 : vector<16x1x32xf32>
    %c0_9 = arith.constant 0 : index
    %c0_10 = arith.constant 0 : index
    %c0_11 = arith.constant 0 : index
    %12 = vector.load %arg4[%c0_9, %c0_10, %c0_11] : memref<16x1x32xf32, #tpu.memory_space<vmem>>, vector<16x1x32xf32>
    tpu.vector_store %arg4[%c0_9, %c0_10, %c0_11], %11 {strides = array<i32>} : memref<16x1x32xf32, #tpu.memory_space<vmem>>, vector<16x1x32xf32>,
    return
  }
  func.func @transform_0(%arg0: i32) -> (i32, i32, i32) {
    %c0_i32 = arith.constant 0 : i32
    %c0_i32_0 = arith.constant 0 : i32
    %c0_i32_1 = arith.constant 0 : i32
    return %arg0, %c0_i32, %c0_i32_0 : i32, i32, i32
  }
  func.func @transform_1(%arg0: i32) -> (i32, i32, i32) {
    %c0_i32 = arith.constant 0 : i32
    %c0_i32_0 = arith.constant 0 : i32
    %c0_i32_1 = arith.constant 0 : i32
    return %arg0, %c0_i32, %c0_i32_0 : i32, i32, i32
  }
  func.func @transform_2(%arg0: i32) -> (i32, i32, i32) {
    %c0_i32 = arith.constant 0 : i32
    %c0_i32_0 = arith.constant 0 : i32
    %c0_i32_1 = arith.constant 0 : i32
    return %arg0, %c0_i32, %c0_i32_0 : i32, i32, i32
  }
  func.func @transform_3(%arg0: i32) -> (i32, i32, i32) {
    %c0_i32 = arith.constant 0 : i32
    %c0_i32_0 = arith.constant 0 : i32
    %c0_i32_1 = arith.constant 0 : i32
    return %arg0, %c0_i32, %c0_i32_0 : i32, i32, i32
  }
}

</mosaic_0001>

<bundles_post_ra>
// kernel: tpu_custom_call.1
= control target key start
LH: loop header
LB: loop body
LE: loop exit
PB: predicated region body
PF: predicated region fallthrough
CT: control target
= control target key end

     0   :  { %8 = vsyncpa [#allocation3], 0  ;;  %s4431_s0 = inlined_call_operand.hbm [shape: f32[16,1,32], index: 0, kind: input, shape index: {}]   ;;  %s4432_s1 = inlined_call_operand.hbm [shape: f32[16,32,32], index: 1, kind: input, shape index: {}]   ;;  %s4433_s2 = inlined_call_operand.hbm [shape: f32[16,1,32], index: 2, kind: input, shape index: {}]   ;;  %s4434_s3 = inlined_call_operand.hbm [shape: f32[16,1,32], index: 3, kind: output, shape index: {}]  }
   0x1   :  { %9 = vsyncpa [#allocation6], 0 }
   0x2   :  { %10 = vsyncpa [#allocation4], 0  ;;  %s3765_s12 = smov [#allocation5]   ;;  %s3671_s16 = scalar_lea.hbm %s4432_s1, 8192 }
   0x3   :  { %s28_s13 = sshll.u32 %s3765_s12, 4  ;;  %p3672_p0 = scmp.ne.s32.totalorder %s4432_s1, %s3671_s16  ;;  %s29_s13 = int_to_ptr.vmem [resolvable:$true] %s28_s13 }
   0x4   :  { %p3675_p1 = scmp.lt.u32.totalorder %s3671_s16, %s4432_s1 }
   0x6   :  { %p3677_p2 = pnand %p3675_p1, %p3672_p0 }
   0x8   :  { %3680 = shalt.err (!%p3677_p2)
}
   0x9   :  { %s3681_s21 = scalar_lea.vmem %s29_s13, 8192  ;;  %p3686_p4 = scmp.lt.s32.totalorder %s29_s13, %s29_s13 }
   0xa   :  { %p3682_p3 = scmp.ne.s32.totalorder %s29_s13, %s3681_s21  ;;  %p3687_p5 = scmp.lt.s32.totalorder %s3681_s21, %s3681_s21 }
   0xc   :  { %p3688_p6 = por %p3687_p5, %p3686_p4 }
   0xe   :  { %p3689_p7 = pnand %p3688_p6, %p3682_p3 }
  0x10   :  { %3692 = shalt.err (!%p3689_p7)
}
  0x11   :  { %s3766_s22 = smov 128   ;;  %s3767_s23 = smov 8  }
  0x12   :  { %34 = dma.hbm_to_vmem [thread:$0]  %s4432_s1, 8192, %s29_s13, [#allocation6], %s3766_s22, %s3766_s22, %s3767_s23  }
  0x13   :  { %s3768_s26 = smov [#allocation2]   ;;  %s3693_s30 = scalar_lea.hbm %s4431_s0, 256 }
  0x14   :  { %s16_s27 = sshll.u32 %s3768_s26, 4  ;;  %p3694_p8 = scmp.ne.s32.totalorder %s4431_s0, %s3693_s30  ;;  %s17_s27 = int_to_ptr.vmem [resolvable:$true] %s16_s27 }
  0x15   :  { %p3697_p9 = scmp.lt.u32.totalorder %s3693_s30, %s4431_s0 }
  0x17   :  { %p3699_p10 = pnand %p3697_p9, %p3694_p8 }
  0x19   :  { %3702 = shalt.err (!%p3699_p10)
}
  0x1a   :  { %s3703_s8 = scalar_lea.vmem %s17_s27, 256  ;;  %p3708_p12 = scmp.lt.s32.totalorder %s17_s27, %s17_s27 }
  0x1b   :  { %p3704_p11 = scmp.ne.s32.totalorder %s17_s27, %s3703_s8  ;;  %p3709_p13 = scmp.lt.s32.totalorder %s3703_s8, %s3703_s8 }
  0x1d   :  { %p3710_p0 = por %p3709_p13, %p3708_p12 }
  0x1f   :  { %p3711_p1 = pnand %p3710_p0, %p3704_p11 }
  0x21   :  { %3714 = shalt.err (!%p3711_p1)
}
  0x22   :  { %s3769_s1 = smov 16   ;;  %s3770_s9 = smov 1  }
  0x23   :  { %22 = dma.hbm_to_vmem [thread:$0]  %s4431_s0, 256, %s17_s27, [#allocation3], %s3769_s1, %s3769_s1, %s3770_s9  }
  0x24   :  { %s3771_s12 = smov [#allocation7]   ;;  %s3715_s16 = scalar_lea.hbm %s4433_s2, 256 }
  0x25   :  { %s40_s13 = sshll.u32 %s3771_s12, 4  ;;  %p3716_p2 = scmp.ne.s32.totalorder %s4433_s2, %s3715_s16  ;;  %s41_s13 = int_to_ptr.vmem [resolvable:$true] %s40_s13 }
  0x26   :  { %p3719_p3 = scmp.lt.u32.totalorder %s3715_s16, %s4433_s2 }
  0x28   :  { %p3721_p4 = pnand %p3719_p3, %p3716_p2 }
  0x2a   :  { %3724 = shalt.err (!%p3721_p4)
}
  0x2b   :  { %s3725_s21 = scalar_lea.vmem %s41_s13, 256  ;;  %p3730_p6 = scmp.lt.s32.totalorder %s41_s13, %s41_s13 }
  0x2c   :  { %p3726_p5 = scmp.ne.s32.totalorder %s41_s13, %s3725_s21  ;;  %p3731_p7 = scmp.lt.s32.totalorder %s3725_s21, %s3725_s21 }
  0x2e   :  { %p3732_p8 = por %p3731_p7, %p3730_p6 }
  0x30   :  { %p3733_p9 = pnand %p3732_p8, %p3726_p5 }
  0x32   :  { %3736 = shalt.err (!%p3733_p9)
}
  0x33   :  { %46 = dma.hbm_to_vmem [thread:$0]  %s4433_s2, 256, %s41_s13, [#allocation6], %s3769_s1, %s3769_s1, %s3770_s9  }
  0x34   :  { %3759 = dma.done.wait [#allocation3], 256  }
  0x35   :  { %3760 = vsyncadd [#allocation3], 4294967040 }
  0x36   :  { %3761 = dma.done.wait [#allocation6], 8448  }
  0x37   :  { %3762 = vsyncadd [#allocation6], 4294958848  ;;  %v3772_v0 = vmov 0.0|0.0   ;;  %vm3773_vm0 = vmmov 0   ;;  %v3774_v1 = vmov 0.0   ;;  %v88_v2 = vld [vmem:[#allocation5] sm:$0xff] }
  0x38   :  { %3436 = vmatprep.subr.bf16.mxu0 %v3772_v0  ;;  %3442 = vmatprep.subr.bf16.mxu1 %v3772_v0  ;;  %v89_v3 = vld [vmem:[#allocation5 + $0x8] sm:$0xff]  ;;  %v92_v4 = vld [vmem:[#allocation5 + $0x20] sm:$0xff]  ;;  %v90_v7 = vld [vmem:[#allocation5 + $0x10] sm:$0xff]  ;;  %vm152_vm1 = vcmask 261120   ;;  %vm2793_vm3 = vcmask 253952   ;;  %s3775_s2 = smov [#allocation8]  }
  0x39   :  { %3092 = vmatprep.mubr.msk.f32.mxu0 %vm3773_vm0, %v3774_v1  ;;  %3103 = vmatprep.mubr.msk.f32.mxu1 %vm3773_vm0, %v3774_v1  ;;  %v3844_v5 = vpack.c.bf16 %v89_v3, %v88_v2  ;;  %v93_v6 = vld [vmem:[#allocation5 + $0x28] sm:$0xff]  ;;  %v91_v8 = vld [vmem:[#allocation5 + $0x18] sm:$0xff]  ;;  %v94_v10 = vld [vmem:[#allocation5 + $0x30] sm:$0xff]  ;;  %s2815_s23 = sshll.u32 %s3775_s2, 4  ;;  %s2816_s23 = int_to_ptr.vmem [resolvable:$true] %s2815_s23 }
  0x3a   :  { %v3846_v9 = vpack.c.bf16 %v93_v6, %v92_v4  ;;  %v95_v11 = vld [vmem:[#allocation5 + $0x38] sm:$0xff]  ;;  %v3849_v12 = vpack.c.bf16 %v91_v8, %v90_v7  ;;  %v96_v14 = vld [vmem:[#allocation5 + $0x40] sm:$0xff]  ;;  %v97_v15 = vld [vmem:[#allocation5 + $0x48] sm:$0xff]  ;;  %s3737_s24 = scalar_lea.vmem %s2816_s23, 256  ;;  %p3742_p11 = scmp.lt.s32.totalorder %s2816_s23, %s2816_s23 }
  0x3b   :  { %3438 = vmatpush3.bf16.msra.mxu0 %v3844_v5  ;;  %v3853_v13 = vpack.c.bf16 %v95_v11, %v94_v10  ;;  %v100_v16 = vld [vmem:[#allocation5 + $0x60] sm:$0xff]  ;;  %v101_v17 = vld [vmem:[#allocation5 + $0x68] sm:$0xff]  ;;  %v3857_v18 = vld [vmem:[#allocation2] sm:$0x1]  ;;  %v3859_v19 = vpack.c.bf16 %v97_v15, %v96_v14  ;;  %p3738_p10 = scmp.ne.s32.totalorder %s2816_s23, %s3737_s24  ;;  %p3743_p12 = scmp.lt.s32.totalorder %s3737_s24, %s3737_s24 }
  0x3c   :  { %3444 = vmatpush3.bf16.msra.mxu1 %v3846_v9  ;;  %3439 = vmatprep.subr.bf16.mxu0 %v3772_v0  ;;  %v3862_v20 = vld [vmem:[#allocation2 + $0x1] sm:$0x1]  ;;  %v3865_v21 = vpack.c.bf16 %v101_v17, %v100_v16  ;;  %v99_v23 = vld [vmem:[#allocation5 + $0x58] sm:$0xff]  ;;  %v104_v28 = vld [vmem:[#allocation5 + $0x80] sm:$0xff] }
  0x3d   :  { %3445 = vmatprep.subr.bf16.mxu1 %v3772_v0  ;;  %v98_v22 = vld [vmem:[#allocation5 + $0x50] sm:$0xff]  ;;  %v103_v25 = vld [vmem:[#allocation5 + $0x78] sm:$0xff]  ;;  %v105_v29 = vld [vmem:[#allocation5 + $0x88] sm:$0xff]  ;;  %p3744_p13 = por %p3743_p12, %p3742_p11 }
  0x3e   :  { %v102_v24 = vld [vmem:[#allocation5 + $0x70] sm:$0xff]  ;;  %v3873_v26 = vpack.c.bf16 %v99_v23, %v98_v22  ;;  %v108_v30 = vld [vmem:[#allocation5 + $0xa0] sm:$0xff]  ;;  %v109_v31 = vld [vmem:[#allocation5 + $0xa8] sm:$0xff]  ;;  %v3887_v33 = vpack.c.bf16 %v105_v29, %v104_v28 }
  0x3f   :  { %3441 = vmatpush3.bf16.msra.mxu0 %v3849_v12  ;;  %v3877_v27 = vpack.c.bf16 %v103_v25, %v102_v24  ;;  %v3885_v32 = vld [vmem:[#allocation2 + $0x2] sm:$0x1]  ;;  %v3890_v34 = vld [vmem:[#allocation2 + $0x3] sm:$0x1]  ;;  %v3893_v35 = vpack.c.bf16 %v109_v31, %v108_v30  ;;  %v107_v37 = vld [vmem:[#allocation5 + $0x98] sm:$0xff]  ;;  %p3745_p0 = pnand %p3744_p13, %p3738_p10 }
  0x40   :  { %3447 = vmatpush3.bf16.msra.mxu1 %v3853_v13  ;;  %3448 = vmatprep.subr.bf16.mxu0 %v3772_v0  ;;  %v106_v36 = vld [vmem:[#allocation5 + $0x90] sm:$0xff]  ;;  %v111_v39 = vld [vmem:[#allocation5 + $0xb8] sm:$0xff]  ;;  %v112_v42 = vld [vmem:[#allocation5 + $0xc0] sm:$0xff] }
  0x41   :  { %3454 = vmatprep.subr.bf16.mxu1 %v3772_v0  ;;  %v110_v38 = vld [vmem:[#allocation5 + $0xb0] sm:$0xff]  ;;  %v3901_v40 = vpack.c.bf16 %v107_v37, %v106_v36  ;;  %v113_v43 = vld [vmem:[#allocation5 + $0xc8] sm:$0xff]  ;;  %v116_v44 = vld [vmem:[#allocation5 + $0xe0] sm:$0xff] }
  0x42   :  { %3093 = vmatmul.mubr.msk.f32.vlgmr.msra.gmra.mrb[0].mxu0 %vm152_vm1, %v3857_v18  ;;  %v3905_v41 = vpack.c.bf16 %v111_v39, %v110_v38  ;;  %v117_v45 = vld [vmem:[#allocation5 + $0xe8] sm:$0xff]  ;;  %v3913_v46 = vld [vmem:[#allocation2 + $0x4] sm:$0x1]  ;;  %v3915_v47 = vpack.c.bf16 %v113_v43, %v112_v42  ;;  %v3918_v48 = vld [vmem:[#allocation2 + $0x5] sm:$0x1] }
  0x43   :  { %3104 = vmatmul.mubr.msk.f32.vlgmr.msra.gmra.mrb[0].mxu1 %vm152_vm1, %v3862_v20  ;;  %3450 = vmatpush3.bf16.msra.mxu0 %v3859_v19  ;;  %v3921_v49 = vpack.c.bf16 %v117_v45, %v116_v44  ;;  %v114_v50 = vld [vmem:[#allocation5 + $0xd0] sm:$0xff]  ;;  %v115_v51 = vld [vmem:[#allocation5 + $0xd8] sm:$0xff]  ;;  %v120_v56 = vld [vmem:[#allocation5 + $0x100] sm:$0xff] }
  0x44   :  { %3456 = vmatpush3.bf16.msra.mxu1 %v3865_v21  ;;  %3451 = vmatprep.subr.bf16.mxu0 %v3772_v0  ;;  %v118_v52 = vld [vmem:[#allocation5 + $0xf0] sm:$0xff]  ;;  %v119_v53 = vld [vmem:[#allocation5 + $0xf8] sm:$0xff]  ;;  %v3929_v54 = vpack.c.bf16 %v115_v51, %v114_v50  ;;  %v121_v57 = vld [vmem:[#allocation5 + $0x108] sm:$0xff] }
  0x45   :  { %3457 = vmatprep.subr.bf16.mxu1 %v3772_v0  ;;  %3114 = vmatprep.mubr.msk.f32.mxu0 %vm3773_vm0, %v3774_v1  ;;  %v3933_v55 = vpack.c.bf16 %v119_v53, %v118_v52  ;;  %v124_v58 = vld [vmem:[#allocation5 + $0x120] sm:$0xff]  ;;  %v125_v59 = vld [vmem:[#allocation5 + $0x128] sm:$0xff]  ;;  %v3941_v60 = vld [vmem:[#allocation2 + $0x6] sm:$0x1]  ;;  %v3943_v61 = vpack.c.bf16 %v121_v57, %v120_v56 }
  0x46   :  { %3125 = vmatprep.mubr.msk.f32.mxu1 %vm3773_vm0, %v3774_v1  ;;  %v3946_v62 = vld [vmem:[#allocation2 + $0x7] sm:$0x1]  ;;  %v3949_v63 = vpack.c.bf16 %v125_v59, %v124_v58  ;;  %v123_v3 = vld [vmem:[#allocation5 + $0x118] sm:$0xff]  ;;  %v128_v10 = vld [vmem:[#allocation5 + $0x140] sm:$0xff] }
  0x47   :  { %3453 = vmatpush3.bf16.msra.mxu0 %v3873_v26  ;;  %v122_v2 = vld [vmem:[#allocation5 + $0x110] sm:$0xff]  ;;  %v127_v6 = vld [vmem:[#allocation5 + $0x138] sm:$0xff]  ;;  %v129_v11 = vld [vmem:[#allocation5 + $0x148] sm:$0xff] }
  0x48   :  { %3459 = vmatpush3.bf16.msra.mxu1 %v3877_v27  ;;  %3460 = vmatprep.subr.bf16.mxu0 %v3772_v0  ;;  %v126_v4 = vld [vmem:[#allocation5 + $0x130] sm:$0xff]  ;;  %v3957_v7 = vpack.c.bf16 %v123_v3, %v122_v2  ;;  %v132_v14 = vld [vmem:[#allocation5 + $0x160] sm:$0xff]  ;;  %v133_v15 = vld [vmem:[#allocation5 + $0x168] sm:$0xff]  ;;  %v3971_v17 = vpack.c.bf16 %v129_v11, %v128_v10 }
  0x49   :  { %3466 = vmatprep.subr.bf16.mxu1 %v3772_v0  ;;  %v3961_v8 = vpack.c.bf16 %v127_v6, %v126_v4  ;;  %v3969_v16 = vld [vmem:[#allocation2 + $0x8] sm:$0x1]  ;;  %v3974_v22 = vld [vmem:[#allocation2 + $0x9] sm:$0x1]  ;;  %v3977_v23 = vpack.c.bf16 %v133_v15, %v132_v14  ;;  %v130_v24 = vld [vmem:[#allocation5 + $0x150] sm:$0xff] }
  0x4a   :  { %3115 = vmatmul.mubr.msk.f32.vlgmr.msra.gmra.mrb[2].mxu0 %vm152_vm1, %v3885_v32  ;;  %v131_v25 = vld [vmem:[#allocation5 + $0x158] sm:$0xff]  ;;  %v134_v28 = vld [vmem:[#allocation5 + $0x170] sm:$0xff]  ;;  %v136_v36 = vld [vmem:[#allocation5 + $0x180] sm:$0xff] }
  0x4b   :  { %3126 = vmatmul.mubr.msk.f32.vlgmr.msra.gmra.mrb[2].mxu1 %vm152_vm1, %v3890_v34  ;;  %3462 = vmatpush3.bf16.msra.mxu0 %v3887_v33  ;;  %v135_v29 = vld [vmem:[#allocation5 + $0x178] sm:$0xff]  ;;  %v3985_v30 = vpack.c.bf16 %v131_v25, %v130_v24  ;;  %v137_v37 = vld [vmem:[#allocation5 + $0x188] sm:$0xff]  ;;  %v140_v38 = vld [vmem:[#allocation5 + $0x1a0] sm:$0xff] }
  0x4c   :  { %3468 = vmatpush3.bf16.msra.mxu1 %v3893_v35  ;;  %3463 = vmatprep.subr.bf16.mxu0 %v3772_v0  ;;  %v3989_v31 = vpack.c.bf16 %v135_v29, %v134_v28  ;;  %v141_v39 = vld [vmem:[#allocation5 + $0x1a8] sm:$0xff]  ;;  %v3997_v42 = vld [vmem:[#allocation2 + $0xa] sm:$0x1]  ;;  %v3999_v43 = vpack.c.bf16 %v137_v37, %v136_v36  ;;  %v4002_v44 = vld [vmem:[#allocation2 + $0xb] sm:$0x1] }
  0x4d   :  { %3469 = vmatprep.subr.bf16.mxu1 %v3772_v0  ;;  %3136 = vmatprep.mubr.msk.f32.mxu0 %vm3773_vm0, %v3774_v1  ;;  %v4005_v45 = vpack.c.bf16 %v141_v39, %v140_v38  ;;  %v138_v50 = vld [vmem:[#allocation5 + $0x190] sm:$0xff]  ;;  %v139_v51 = vld [vmem:[#allocation5 + $0x198] sm:$0xff]  ;;  %v144_v58 = vld [vmem:[#allocation5 + $0x1c0] sm:$0xff] }
  0x4e   :  { %3147 = vmatprep.mubr.msk.f32.mxu1 %vm3773_vm0, %v3774_v1  ;;  %v142_v52 = vld [vmem:[#allocation5 + $0x1b0] sm:$0xff]  ;;  %v143_v53 = vld [vmem:[#allocation5 + $0x1b8] sm:$0xff]  ;;  %v4013_v56 = vpack.c.bf16 %v139_v51, %v138_v50  ;;  %v145_v59 = vld [vmem:[#allocation5 + $0x1c8] sm:$0xff]  ;;  %v2684_v51 = vmul.f32 %v3890_v34, %v3890_v34 }
  0x4f   :  { %3465 = vmatpush3.bf16.msra.mxu0 %v3901_v40  ;;  %v4017_v57 = vpack.c.bf16 %v143_v53, %v142_v52  ;;  %v148_v2 = vld [vmem:[#allocation5 + $0x1e0] sm:$0xff]  ;;  %v149_v3 = vld [vmem:[#allocation5 + $0x1e8] sm:$0xff]  ;;  %v4025_v4 = vld [vmem:[#allocation2 + $0xc] sm:$0x1]  ;;  %v4027_v6 = vpack.c.bf16 %v145_v59, %v144_v58 }
  0x50   :  { %3471 = vmatpush3.bf16.msra.mxu1 %v3905_v41  ;;  %3472 = vmatprep.subr.bf16.mxu0 %v3772_v0  ;;  %v4030_v10 = vld [vmem:[#allocation2 + $0xd] sm:$0x1]  ;;  %v4033_v11 = vpack.c.bf16 %v149_v3, %v148_v2  ;;  %v146_v14 = vld [vmem:[#allocation5 + $0x1d0] sm:$0xff]  ;;  %v4053_v36 = vld [vmem:[#allocation2 + $0xe] sm:$0x1] }
  0x51   :  { %3478 = vmatprep.subr.bf16.mxu1 %v3772_v0  ;;  %v147_v15 = vld [vmem:[#allocation5 + $0x1d8] sm:$0xff]  ;;  %v150_v24 = vld [vmem:[#allocation5 + $0x1f0] sm:$0xff]  ;;  %vm4070_vm2 = vmpackc.low %vm152_vm1, %vm152_vm1 }
  0x52   :  { %3137 = vmatmul.mubr.msk.f32.vlgmr.msra.gmra.mrb[4].mxu0 %vm152_vm1, %v3913_v46  ;;  %v151_v25 = vld [vmem:[#allocation5 + $0x1f8] sm:$0xff]  ;;  %v4041_v28 = vpack.c.bf16 %v147_v15, %v146_v14  ;;  %v73_v39 = vld [vmem:[#allocation7 + $0x1] sm:$0x1]  ;;  %v2686_v15 = vmul.f32 %v3918_v48, %v3918_v48 }
  0x53   :  { %3148 = vmatmul.mubr.msk.f32.vlgmr.msra.gmra.mrb[4].mxu1 %vm152_vm1, %v3918_v48  ;;  %3474 = vmatpush3.bf16.msra.mxu0 %v3915_v47  ;;  %v4045_v29 = vpack.c.bf16 %v151_v25, %v150_v24  ;;  %v4056_v37 = vld [vmem:[#allocation2 + $0xf] sm:$0x1] }
  0x54   :  { %3480 = vmatpush3.bf16.msra.mxu1 %v3921_v49  ;;  %3475 = vmatprep.subr.bf16.mxu0 %v3772_v0 }
  0x55   :  { %3481 = vmatprep.subr.bf16.mxu1 %v3772_v0  ;;  %3158 = vmatprep.mubr.msk.f32.mxu0 %vm3773_vm0, %v3774_v1 }
  0x56   :  { %3169 = vmatprep.mubr.msk.f32.mxu1 %vm3773_vm0, %v3774_v1 }
  0x57   :  { %3477 = vmatpush3.bf16.msra.mxu0 %v3929_v54 }
  0x58   :  { %3483 = vmatpush3.bf16.msra.mxu1 %v3933_v55  ;;  %3484 = vmatprep.subr.bf16.mxu0 %v3772_v0 }
  0x59   :  { %3490 = vmatprep.subr.bf16.mxu1 %v3772_v0 }
  0x5a   :  { %3159 = vmatmul.mubr.msk.f32.vlgmr.msra.gmra.mrb[6].mxu0 %vm152_vm1, %v3941_v60 }
  0x5b   :  { %3170 = vmatmul.mubr.msk.f32.vlgmr.msra.gmra.mrb[6].mxu1 %vm152_vm1, %v3946_v62  ;;  %3486 = vmatpush3.bf16.msra.mxu0 %v3943_v61 }
  0x5c   :  { %3492 = vmatpush3.bf16.msra.mxu1 %v3949_v63  ;;  %3487 = vmatprep.subr.bf16.mxu0 %v3772_v0 }
  0x5d   :  { %3493 = vmatprep.subr.bf16.mxu1 %v3772_v0  ;;  %3180 = vmatprep.mubr.msk.f32.mxu0 %vm3773_vm0, %v3774_v1 }
  0x5e   :  { %3191 = vmatprep.mubr.msk.f32.mxu1 %vm3773_vm0, %v3774_v1 }
  0x5f   :  { %3489 = vmatpush3.bf16.msra.mxu0 %v3957_v7 }
  0x60   :  { %3495 = vmatpush3.bf16.msra.mxu1 %v3961_v8  ;;  %3496 = vmatprep.subr.bf16.mxu0 %v3772_v0 }
  0x61   :  { %3502 = vmatprep.subr.bf16.mxu1 %v3772_v0 }
  0x62   :  { %3181 = vmatmul.mubr.msk.f32.vlgmr.msra.gmra.mrb[8].mxu0 %vm152_vm1, %v3969_v16 }
  0x63   :  { %3192 = vmatmul.mubr.msk.f32.vlgmr.msra.gmra.mrb[8].mxu1 %vm152_vm1, %v3974_v22  ;;  %3498 = vmatpush3.bf16.msra.mxu0 %v3971_v17 }
  0x64   :  { %3504 = vmatpush3.bf16.msra.mxu1 %v3977_v23  ;;  %3499 = vmatprep.subr.bf16.mxu0 %v3772_v0 }
  0x65   :  { %3505 = vmatprep.subr.bf16.mxu1 %v3772_v0  ;;  %3202 = vmatprep.mubr.msk.f32.mxu0 %vm3773_vm0, %v3774_v1 }
  0x66   :  { %3213 = vmatprep.mubr.msk.f32.mxu1 %vm3773_vm0, %v3774_v1 }
  0x67   :  { %3501 = vmatpush3.bf16.msra.mxu0 %v3985_v30 }
  0x68   :  { %3507 = vmatpush3.bf16.msra.mxu1 %v3989_v31  ;;  %3508 = vmatprep.subr.bf16.mxu0 %v3772_v0 }
  0x69   :  { %3514 = vmatprep.subr.bf16.mxu1 %v3772_v0 }
  0x6a   :  { %3203 = vmatmul.mubr.msk.f32.vlgmr.msra.gmra.mrb[10].mxu0 %vm152_vm1, %v3997_v42 }
  0x6b   :  { %3214 = vmatmul.mubr.msk.f32.vlgmr.msra.gmra.mrb[10].mxu1 %vm152_vm1, %v4002_v44  ;;  %3510 = vmatpush3.bf16.msra.mxu0 %v3999_v43 }
  0x6c   :  { %3516 = vmatpush3.bf16.msra.mxu1 %v4005_v45  ;;  %3511 = vmatprep.subr.bf16.mxu0 %v3772_v0 }
  0x6d   :  { %3517 = vmatprep.subr.bf16.mxu1 %v3772_v0  ;;  %3224 = vmatprep.mubr.msk.f32.mxu0 %vm3773_vm0, %v3774_v1 }
  0x6e   :  { %3235 = vmatprep.mubr.msk.f32.mxu1 %vm3773_vm0, %v3774_v1 }
  0x6f   :  { %3513 = vmatpush3.bf16.msra.mxu0 %v4013_v56 }
  0x70   :  { %3519 = vmatpush3.bf16.msra.mxu1 %v4017_v57  ;;  %3520 = vmatprep.subr.bf16.mxu0 %v3772_v0 }
  0x71   :  { %3526 = vmatprep.subr.bf16.mxu1 %v3772_v0 }
  0x72   :  { %3225 = vmatmul.mubr.msk.f32.vlgmr.msra.gmra.mrb[12].mxu0 %vm152_vm1, %v4025_v4 }
  0x73   :  { %3236 = vmatmul.mubr.msk.f32.vlgmr.msra.gmra.mrb[12].mxu1 %vm152_vm1, %v4030_v10  ;;  %3522 = vmatpush3.bf16.msra.mxu0 %v4027_v6 }
  0x74   :  { %3528 = vmatpush3.bf16.msra.mxu1 %v4033_v11  ;;  %3523 = vmatprep.subr.bf16.mxu0 %v3772_v0 }
  0x75   :  { %3529 = vmatprep.subr.bf16.mxu1 %v3772_v0  ;;  %3246 = vmatprep.mubr.msk.f32.mxu0 %vm3773_vm0, %v3774_v1 }
  0x76   :  { %3257 = vmatprep.mubr.msk.f32.mxu1 %vm3773_vm0, %v3774_v1 }
  0x77   :  { %3525 = vmatpush3.bf16.msra.mxu0 %v4041_v28 }
  0x78   :  { %3531 = vmatpush3.bf16.msra.mxu1 %v4045_v29  ;;  %3532 = vmatprep.subr.bf16.mxu0 %v3772_v0 }
  0x79   :  { %3540 = vmatprep.subr.bf16.mxu1 %v3772_v0 }
  0x7a   :  { %3247 = vmatmul.mubr.msk.f32.vlgmr.msra.gmra.mrb[14].mxu0 %vm152_vm1, %v4053_v36 }
  0x7b   :  { %3258 = vmatmul.mubr.msk.f32.vlgmr.msra.gmra.mrb[14].mxu1 %vm152_vm1, %v4056_v37  ;;  %3268 = vmatprep.mubr.msk.f32.mxu0 %vm3773_vm0, %v3774_v1 }
  0x7c   :  { %3279 = vmatprep.mubr.msk.f32.mxu1 %vm3773_vm0, %v3774_v1 }
  0x80   :  { %3535 = vmatpush3.bf16.xpose.msk.msra.mxu0 %vm4070_vm2, %v3844_v5  ;;  %v72_v5 = vld [vmem:[#allocation7] sm:$0x1] }
  0x81   :  { %3543 = vmatpush3.bf16.xpose.msk.msra.mxu1 %vm4070_vm2, %v3846_v9  ;;  %3536 = vmatprep.subr.bf16.mxu0 %v3772_v0  ;;  %v2681_v9 = vmul.f32 %v3857_v18, %v3857_v18  ;;  %v4120_v18 = vld [vmem:[#allocation7 + $0x2] sm:$0x1] }
  0x82   :  { %3544 = vmatprep.subr.bf16.mxu1 %v3772_v0 }
  0x88   :  { %3539 = vmatpush3.bf16.xpose.msk.msra.mxu0 %vm4070_vm2, %v3849_v12  ;;  %v2682_v12 = vmul.f32 %v3862_v20, %v3862_v20  ;;  %v4122_v20 = vld [vmem:[#allocation7 + $0x3] sm:$0x1] }
  0x89   :  { %3547 = vmatpush3.bf16.xpose.msk.msra.mxu1 %vm4070_vm2, %v3853_v13  ;;  %3548 = vmatprep.subr.bf16.mxu0 %v3772_v0  ;;  %v2697_v13 = vmul.f32 %v72_v5, %v72_v5  ;;  %v2700_v52 = vmul.f32 %v4122_v20, %v4122_v20 }
  0x8a   :  { %3556 = vmatprep.subr.bf16.mxu1 %v3772_v0 }
  0x8b   :  { %v4108_v50 = vadd.f32 %v2697_v13, %v2681_v9  ;;  %v2687_v13 = vmul.f32 %v3941_v60, %v3941_v60 }
  0x8f   :  { %3269 = vmatmul.mubr.msk.f32.vlgmr.msra.gmra.mrb[16].mxu0 %vm152_vm1, %v72_v5 }
  0x90   :  { %3280 = vmatmul.mubr.msk.f32.vlgmr.msra.gmra.mrb[16].mxu1 %vm152_vm1, %v73_v39  ;;  %3551 = vmatpush3.bf16.xpose.msk.msra.mxu0 %vm4070_vm2, %v3859_v19  ;;  %v2698_v19 = vmul.f32 %v73_v39, %v73_v39 }
  0x91   :  { %3559 = vmatpush3.bf16.xpose.msk.msra.mxu1 %vm4070_vm2, %v3865_v21  ;;  %3552 = vmatprep.subr.bf16.mxu0 %v3772_v0 }
  0x92   :  { %3560 = vmatprep.subr.bf16.mxu1 %v3772_v0  ;;  %3290 = vmatprep.mubr.msk.f32.mxu0 %vm3773_vm0, %v3774_v1  ;;  %v4113_v21 = vadd.f32 %v2698_v19, %v2682_v12 }
  0x93   :  { %3301 = vmatprep.mubr.msk.f32.mxu1 %vm3773_vm0, %v3774_v1 }
  0x98   :  { %3555 = vmatpush3.bf16.xpose.msk.msra.mxu0 %vm4070_vm2, %v3873_v26  ;;  %v4148_v26 = vld [vmem:[#allocation7 + $0x4] sm:$0x1] }
  0x99   :  { %3563 = vmatpush3.bf16.xpose.msk.msra.mxu1 %vm4070_vm2, %v3877_v27  ;;  %3564 = vmatprep.subr.bf16.mxu0 %v3772_v0  ;;  %v4150_v27 = vld [vmem:[#allocation7 + $0x5] sm:$0x1]  ;;  %v2701_v14 = vmul.f32 %v4148_v26, %v4148_v26 }
  0x9a   :  { %3572 = vmatprep.subr.bf16.mxu1 %v3772_v0  ;;  %v2702_v24 = vmul.f32 %v4150_v27, %v4150_v27 }
  0x9f   :  { %3291 = vmatmul.mubr.msk.f32.vlgmr.msra.gmra.mrb[18].mxu0 %vm152_vm1, %v4120_v18 }
  0xa0   :  { %3302 = vmatmul.mubr.msk.f32.vlgmr.msra.gmra.mrb[18].mxu1 %vm152_vm1, %v4122_v20  ;;  %3567 = vmatpush3.bf16.xpose.msk.msra.mxu0 %vm4070_vm2, %v3887_v33  ;;  %v4176_v33 = vld [vmem:[#allocation7 + $0x6] sm:$0x1] }
  0xa1   :  { %3575 = vmatpush3.bf16.xpose.msk.msra.mxu1 %vm4070_vm2, %v3893_v35  ;;  %3568 = vmatprep.subr.bf16.mxu0 %v3772_v0  ;;  %v4178_v35 = vld [vmem:[#allocation7 + $0x7] sm:$0x1]  ;;  %v2703_v19 = vmul.f32 %v4176_v33, %v4176_v33 }
  0xa2   :  { %3576 = vmatprep.subr.bf16.mxu1 %v3772_v0  ;;  %3312 = vmatprep.mubr.msk.f32.mxu0 %vm3773_vm0, %v3774_v1 }
  0xa3   :  { %3323 = vmatprep.mubr.msk.f32.mxu1 %vm3773_vm0, %v3774_v1 }
  0xa8   :  { %3571 = vmatpush3.bf16.xpose.msk.msra.mxu0 %vm4070_vm2, %v3901_v40  ;;  %v4204_v40 = vld [vmem:[#allocation7 + $0x8] sm:$0x1] }
  0xa9   :  { %3579 = vmatpush3.bf16.xpose.msk.msra.mxu1 %vm4070_vm2, %v3905_v41  ;;  %3580 = vmatprep.subr.bf16.mxu0 %v3772_v0  ;;  %v4206_v41 = vld [vmem:[#allocation7 + $0x9] sm:$0x1] }
  0xaa   :  { %3588 = vmatprep.subr.bf16.mxu1 %v3772_v0 }
  0xaf   :  { %3313 = vmatmul.mubr.msk.f32.vlgmr.msra.gmra.mrb[20].mxu0 %vm152_vm1, %v4148_v26 }
  0xb0   :  { %3324 = vmatmul.mubr.msk.f32.vlgmr.msra.gmra.mrb[20].mxu1 %vm152_vm1, %v4150_v27  ;;  %3583 = vmatpush3.bf16.xpose.msk.msra.mxu0 %vm4070_vm2, %v3915_v47  ;;  %v4232_v47 = vld [vmem:[#allocation7 + $0xa] sm:$0x1] }
  0xb1   :  { %3591 = vmatpush3.bf16.xpose.msk.msra.mxu1 %vm4070_vm2, %v3921_v49  ;;  %3584 = vmatprep.subr.bf16.mxu0 %v3772_v0  ;;  %v4234_v49 = vld [vmem:[#allocation7 + $0xb] sm:$0x1] }
  0xb2   :  { %3592 = vmatprep.subr.bf16.mxu1 %v3772_v0  ;;  %3334 = vmatprep.mubr.msk.f32.mxu0 %vm3773_vm0, %v3774_v1 }
  0xb3   :  { %3345 = vmatprep.mubr.msk.f32.mxu1 %vm3773_vm0, %v3774_v1 }
  0xb8   :  { %3587 = vmatpush3.bf16.xpose.msk.msra.mxu0 %vm4070_vm2, %v3929_v54  ;;  %v4260_v54 = vld [vmem:[#allocation7 + $0xc] sm:$0x1] }
  0xb9   :  { %3595 = vmatpush3.bf16.xpose.msk.msra.mxu1 %vm4070_vm2, %v3933_v55  ;;  %3596 = vmatprep.subr.bf16.mxu0 %v3772_v0  ;;  %v4262_v55 = vld [vmem:[#allocation7 + $0xd] sm:$0x1] }
  0xba   :  { %3604 = vmatprep.subr.bf16.mxu1 %v3772_v0 }
  0xbf   :  { %3335 = vmatmul.mubr.msk.f32.vlgmr.msra.gmra.mrb[22].mxu0 %vm152_vm1, %v4176_v33  ;;  %v2689_v33 = vmul.f32 %v3969_v16, %v3969_v16 }
  0xc0   :  { %3346 = vmatmul.mubr.msk.f32.vlgmr.msra.gmra.mrb[22].mxu1 %vm152_vm1, %v4178_v35  ;;  %3599 = vmatpush3.bf16.xpose.msk.msra.mxu0 %vm4070_vm2, %v3943_v61  ;;  %v4286_v61 = vld [vmem:[#allocation7 + $0xe] sm:$0x1] }
  0xc1   :  { %3607 = vmatpush3.bf16.xpose.msk.msra.mxu1 %vm4070_vm2, %v3949_v63  ;;  %3600 = vmatprep.subr.bf16.mxu0 %v3772_v0  ;;  %v4288_v63 = vld [vmem:[#allocation7 + $0xf] sm:$0x1] }
  0xc2   :  { %3608 = vmatprep.subr.bf16.mxu1 %v3772_v0  ;;  %3356 = vmatprep.mubr.msk.f32.mxu0 %vm3773_vm0, %v3774_v1 }
  0xc3   :  { %3367 = vmatprep.mubr.msk.f32.mxu1 %vm3773_vm0, %v3774_v1 }
  0xc8   :  { %3603 = vmatpush3.bf16.xpose.msk.msra.mxu0 %vm4070_vm2, %v3957_v7 }
  0xc9   :  { %3611 = vmatpush3.bf16.xpose.msk.msra.mxu1 %vm4070_vm2, %v3961_v8  ;;  %3612 = vmatprep.subr.bf16.mxu0 %v3772_v0 }
  0xca   :  { %3620 = vmatprep.subr.bf16.mxu1 %v3772_v0 }
  0xcf   :  { %3357 = vmatmul.mubr.msk.f32.vlgmr.msra.gmra.mrb[24].mxu0 %vm152_vm1, %v4204_v40 }
  0xd0   :  { %3368 = vmatmul.mubr.msk.f32.vlgmr.msra.gmra.mrb[24].mxu1 %vm152_vm1, %v4206_v41  ;;  %3615 = vmatpush3.bf16.xpose.msk.msra.mxu0 %vm4070_vm2, %v3971_v17 }
  0xd1   :  { %3623 = vmatpush3.bf16.xpose.msk.msra.mxu1 %vm4070_vm2, %v3977_v23  ;;  %3616 = vmatprep.subr.bf16.mxu0 %v3772_v0 }
  0xd2   :  { %3624 = vmatprep.subr.bf16.mxu1 %v3772_v0  ;;  %3378 = vmatprep.mubr.msk.f32.mxu0 %vm3773_vm0, %v3774_v1 }
  0xd3   :  { %3389 = vmatprep.mubr.msk.f32.mxu1 %vm3773_vm0, %v3774_v1 }
  0xd8   :  { %3619 = vmatpush3.bf16.xpose.msk.msra.mxu0 %vm4070_vm2, %v3985_v30 }
  0xd9   :  { %3627 = vmatpush3.bf16.xpose.msk.msra.mxu1 %vm4070_vm2, %v3989_v31  ;;  %3628 = vmatprep.subr.bf16.mxu0 %v3772_v0  ;;  %v2683_v31 = vmul.f32 %v3885_v32, %v3885_v32 }
  0xda   :  { %3636 = vmatprep.subr.bf16.mxu1 %v3772_v0 }
  0xdf   :  { %3379 = vmatmul.mubr.msk.f32.vlgmr.msra.gmra.mrb[26].mxu0 %vm152_vm1, %v4232_v47 }
  0xe0   :  { %3390 = vmatmul.mubr.msk.f32.vlgmr.msra.gmra.mrb[26].mxu1 %vm152_vm1, %v4234_v49  ;;  %3631 = vmatpush3.bf16.xpose.msk.msra.mxu0 %vm4070_vm2, %v3999_v43  ;;  %v2699_v43 = vmul.f32 %v4120_v18, %v4120_v18  ;;  %v2719_v18 = vadd.f32 %v2703_v19, %v2687_v13 }
  0xe1   :  { %3639 = vmatpush3.bf16.xpose.msk.msra.mxu1 %vm4070_vm2, %v4005_v45  ;;  %3632 = vmatprep.subr.bf16.mxu0 %v3772_v0 }
  0xe2   :  { %3640 = vmatprep.subr.bf16.mxu1 %v3772_v0  ;;  %3400 = vmatprep.mubr.msk.f32.mxu0 %vm3773_vm0, %v3774_v1  ;;  %v2715_v53 = vadd.f32 %v2699_v43, %v2683_v31 }
  0xe3   :  { %3411 = vmatprep.mubr.msk.f32.mxu1 %vm3773_vm0, %v3774_v1 }
  0xe8   :  { %3635 = vmatpush3.bf16.xpose.msk.msra.mxu0 %vm4070_vm2, %v4013_v56 }
  0xe9   :  { %3643 = vmatpush3.bf16.xpose.msk.msra.mxu1 %vm4070_vm2, %v4017_v57  ;;  %3644 = vmatprep.subr.bf16.mxu0 %v3772_v0  ;;  %v2716_v57 = vadd.f32 %v2700_v52, %v2684_v51 }
  0xea   :  { %3652 = vmatprep.subr.bf16.mxu1 %v3772_v0 }
  0xef   :  { %3401 = vmatmul.mubr.msk.f32.vlgmr.msra.gmra.mrb[28].mxu0 %vm152_vm1, %v4260_v54 }
  0xf0   :  { %3412 = vmatmul.mubr.msk.f32.vlgmr.msra.gmra.mrb[28].mxu1 %vm152_vm1, %v4262_v55  ;;  %3647 = vmatpush3.bf16.xpose.msk.msra.mxu0 %vm4070_vm2, %v4027_v6 }
  0xf1   :  { %3655 = vmatpush3.bf16.xpose.msk.msra.mxu1 %vm4070_vm2, %v4033_v11  ;;  %3648 = vmatprep.subr.bf16.mxu0 %v3772_v0  ;;  %v2685_v11 = vmul.f32 %v3913_v46, %v3913_v46 }
  0xf2   :  { %3656 = vmatprep.subr.bf16.mxu1 %v3772_v0  ;;  %3422 = vmatprep.mubr.msk.f32.mxu0 %vm3773_vm0, %v3774_v1 }
  0xf3   :  { %3433 = vmatprep.mubr.msk.f32.mxu1 %vm3773_vm0, %v3774_v1  ;;  %v2717_v25 = vadd.f32 %v2701_v14, %v2685_v11 }
  0xf8   :  { %3651 = vmatpush3.bf16.xpose.msk.msra.mxu0 %vm4070_vm2, %v4041_v28 }
  0xf9   :  { %3659 = vmatpush3.bf16.xpose.msk.msra.mxu1 %vm4070_vm2, %v4045_v29  ;;  %v2718_v29 = vadd.f32 %v2702_v24, %v2686_v15 }
  0xff   :  { %3423 = vmatmul.mubr.msk.f32.vlgmr.msra.gmra.mrb[30].mxu0 %vm152_vm1, %v4286_v61 }
 0x100   :  { %3434 = vmatmul.mubr.msk.f32.vlgmr.msra.gmra.mrb[30].mxu1 %vm152_vm1, %v4288_v63 }
 0x115   :  { %v222_v0 = vpop.f32.mrb[0].mxu0 }
 0x116   :  { %v2729_v1 = vmul.f32 %v222_v0, %v222_v0  ;;  %v295_v7 = vpop.f32.mrb[0].mxu1  ;;  %v3094_v8 = vpop.f32.mrb[1].mxu0 }
 0x117   :  { %v2730_v17 = vmul.f32 %v295_v7, %v295_v7  ;;  %v3105_v23 = vpop.f32.mrb[1].mxu1 }
 0x118   :  { %v4295_v30 = vadd.f32 %v2729_v1, %v4108_v50  ;;  %v2688_v50 = vmul.f32 %v3946_v62, %v3946_v62  ;;  %v2706_v23 = vmul.f32 %v4206_v41, %v4206_v41  ;;  %v2692_v41 = vmul.f32 %v4002_v44, %v4002_v44 }
 0x119   :  { %v4302_v45 = vadd.f32 %v2730_v17, %v4113_v21  ;;  %v2704_v21 = vmul.f32 %v4178_v35, %v4178_v35  ;;  %v2705_v17 = vmul.f32 %v4204_v40, %v4204_v40  ;;  %v2690_v35 = vmul.f32 %v3974_v22, %v3974_v22 }
 0x11a   :  { %v2691_v40 = vmul.f32 %v3997_v42, %v3997_v42 }
 0x11b   :  { %v2720_v26 = vadd.f32 %v2704_v21, %v2688_v50  ;;  %v2721_v31 = vadd.f32 %v2705_v17, %v2689_v33  ;;  %v2722_v51 = vadd.f32 %v2706_v23, %v2690_v35 }
 0x11d   :  { %v368_v56 = vpop.f32.mrb[2].mxu0 }
 0x11e   :  { %v2731_v58 = vmul.f32 %v368_v56, %v368_v56  ;;  %v441_v59 = vpop.f32.mrb[2].mxu1  ;;  %v3116_v2 = vpop.f32.mrb[3].mxu0 }
 0x11f   :  { %v2732_v3 = vmul.f32 %v441_v59, %v441_v59  ;;  %v3127_v32 = vpop.f32.mrb[3].mxu1  ;;  %v2707_v59 = vmul.f32 %v4232_v47, %v4232_v47  ;;  %v2708_v2 = vmul.f32 %v4234_v49, %v4234_v49  ;;  %v2693_v47 = vmul.f32 %v4025_v4, %v4025_v4 }
 0x120   :  { %v4308_v6 = vadd.f32 %v2731_v58, %v2715_v53  ;;  %v2694_v49 = vmul.f32 %v4030_v10, %v4030_v10 }
 0x121   :  { %v4314_v34 = vadd.f32 %v2732_v3, %v2716_v57  ;;  %v2723_v3 = vadd.f32 %v2707_v59, %v2691_v40  ;;  %v2724_v11 = vadd.f32 %v2708_v2, %v2692_v41 }
 0x125   :  { %v514_v28 = vpop.f32.mrb[4].mxu0 }
 0x126   :  { %v2733_v38 = vmul.f32 %v514_v28, %v514_v28  ;;  %v587_v5 = vpop.f32.mrb[4].mxu1  ;;  %v3138_v39 = vpop.f32.mrb[5].mxu0 }
 0x127   :  { %v2734_v9 = vmul.f32 %v587_v5, %v587_v5  ;;  %v3149_v12 = vpop.f32.mrb[5].mxu1 }
 0x128   :  { %v4320_v46 = vadd.f32 %v2733_v38, %v2717_v25  ;;  %v2710_v38 = vmul.f32 %v4262_v55, %v4262_v55  ;;  %v2696_v55 = vmul.f32 %v4056_v37, %v4056_v37 }
 0x129   :  { %v4326_v48 = vadd.f32 %v2734_v9, %v2718_v29  ;;  %v2709_v29 = vmul.f32 %v4260_v54, %v4260_v54  ;;  %v2695_v54 = vmul.f32 %v4053_v36, %v4053_v36 }
 0x12a   :  { %v2726_v9 = vadd.f32 %v2710_v38, %v2694_v49 }
 0x12b   :  { %v2725_v5 = vadd.f32 %v2709_v29, %v2693_v47 }
 0x12d   :  { %v660_v20 = vpop.f32.mrb[6].mxu0 }
 0x12e   :  { %v2735_v27 = vmul.f32 %v660_v20, %v660_v20  ;;  %v733_v0 = vpop.f32.mrb[6].mxu1  ;;  %v3160_v1 = vpop.f32.mrb[7].mxu0  ;;  %v2712_v20 = vmul.f32 %v4288_v63, %v4288_v63 }
 0x12f   :  { %v2736_v7 = vmul.f32 %v733_v0, %v733_v0  ;;  %v3171_v8 = vpop.f32.mrb[7].mxu1 }
 0x130   :  { %v4332_v60 = vadd.f32 %v2735_v27, %v2719_v18  ;;  %v2711_v18 = vmul.f32 %v4286_v61, %v4286_v61  ;;  %v2728_v0 = vadd.f32 %v2712_v20, %v2696_v55 }
 0x131   :  { %v4338_v62 = vadd.f32 %v2736_v7, %v2720_v26 }
 0x132   :  { %v2727_v26 = vadd.f32 %v2711_v18, %v2695_v54 }
 0x135   :  { %v806_v43 = vpop.f32.mrb[8].mxu0 }
 0x136   :  { %v2737_v52 = vmul.f32 %v806_v43, %v806_v43  ;;  %v879_v53 = vpop.f32.mrb[8].mxu1  ;;  %v3182_v56 = vpop.f32.mrb[9].mxu0 }
 0x137   :  { %v2738_v57 = vmul.f32 %v879_v53, %v879_v53  ;;  %v3193_v58 = vpop.f32.mrb[9].mxu1 }
 0x138   :  { %v4344_v16 = vadd.f32 %v2737_v52, %v2721_v31 }
 0x139   :  { %v4350_v22 = vadd.f32 %v2738_v57, %v2722_v51 }
 0x13d   :  { %v952_v32 = vpop.f32.mrb[10].mxu0 }
 0x13e   :  { %v2739_v14 = vmul.f32 %v952_v32, %v952_v32  ;;  %v1025_v15 = vpop.f32.mrb[10].mxu1  ;;  %v3204_v24 = vpop.f32.mrb[11].mxu0 }
 0x13f   :  { %v2740_v25 = vmul.f32 %v1025_v15, %v1025_v15  ;;  %v3215_v28 = vpop.f32.mrb[11].mxu1 }
 0x140   :  { %v4356_v42 = vadd.f32 %v2739_v14, %v2723_v3 }
 0x141   :  { %v4362_v44 = vadd.f32 %v2740_v25, %v2724_v11 }
 0x145   :  { %v1098_v39 = vpop.f32.mrb[12].mxu0 }
 0x146   :  { %v2741_v12 = vmul.f32 %v1098_v39, %v1098_v39  ;;  %v1171_v13 = vpop.f32.mrb[12].mxu1  ;;  %v3226_v19 = vpop.f32.mrb[13].mxu0 }
 0x147   :  { %v2742_v50 = vmul.f32 %v1171_v13, %v1171_v13  ;;  %v3237_v21 = vpop.f32.mrb[13].mxu1 }
 0x148   :  { %v4368_v4 = vadd.f32 %v2741_v12, %v2725_v5 }
 0x149   :  { %v4374_v10 = vadd.f32 %v2742_v50, %v2726_v9 }
 0x14d   :  { %v1244_v27 = vpop.f32.mrb[14].mxu0 }
 0x14e   :  { %v2743_v1 = vmul.f32 %v1244_v27, %v1244_v27  ;;  %v1317_v7 = vpop.f32.mrb[14].mxu1  ;;  %v3248_v8 = vpop.f32.mrb[15].mxu0 }
 0x14f   :  { %v2744_v33 = vmul.f32 %v1317_v7, %v1317_v7  ;;  %v3259_v17 = vpop.f32.mrb[15].mxu1 }
 0x150   :  { %v4380_v36 = vadd.f32 %v2743_v1, %v2727_v26 }
 0x151   :  { %v4382_v35 = vadd.f32 %v2744_v33, %v2728_v0 }
 0x162   :  { %v1402_v61 = vpop.f32.mrb[16].mxu0 }
 0x163   :  { %v2761_v23 = vmul.f32 %v1402_v61, %v1402_v61  ;;  %v1487_v31 = vpop.f32.mrb[16].mxu1  ;;  %v3270_v43 = vpop.f32.mrb[17].mxu0 }
 0x164   :  { %v2762_v37 = vmul.f32 %v1487_v31, %v1487_v31  ;;  %v3281_v51 = vpop.f32.mrb[17].mxu1 }
 0x165   :  { %v2777_v63 = vadd.f32 %v2761_v23, %v4295_v30 }
 0x166   :  { %v2778_v52 = vadd.f32 %v2762_v37, %v4302_v45 }
 0x167   :  { %2794 = vst.msk [vmem:[#allocation8] sm:$0x1] %vm2793_vm3, %v2777_v63 }
 0x168   :  { %2795 = vst.msk [vmem:[#allocation8 + $0x1] sm:$0x1] %vm2793_vm3, %v2778_v52 }
 0x172   :  { %v1572_v53 = vpop.f32.mrb[18].mxu0 }
 0x173   :  { %v2763_v56 = vmul.f32 %v1572_v53, %v1572_v53  ;;  %v1657_v57 = vpop.f32.mrb[18].mxu1  ;;  %v3292_v58 = vpop.f32.mrb[19].mxu0 }
 0x174   :  { %v2764_v40 = vmul.f32 %v1657_v57, %v1657_v57  ;;  %v3303_v59 = vpop.f32.mrb[19].mxu1 }
 0x175   :  { %v2779_v41 = vadd.f32 %v2763_v56, %v4308_v6 }
 0x176   :  { %v2780_v2 = vadd.f32 %v2764_v40, %v4314_v34 }
 0x177   :  { %2796 = vst.msk [vmem:[#allocation8 + $0x2] sm:$0x1] %vm2793_vm3, %v2779_v41 }
 0x178   :  { %2797 = vst.msk [vmem:[#allocation8 + $0x3] sm:$0x1] %vm2793_vm3, %v2780_v2 }
 0x182   :  { %v1742_v30 = vpop.f32.mrb[20].mxu0 }
 0x183   :  { %v2765_v45 = vmul.f32 %v1742_v30, %v1742_v30  ;;  %v1827_v3 = vpop.f32.mrb[20].mxu1  ;;  %v3314_v32 = vpop.f32.mrb[21].mxu0 }
 0x184   :  { %v2766_v11 = vmul.f32 %v1827_v3, %v1827_v3  ;;  %v3325_v14 = vpop.f32.mrb[21].mxu1 }
 0x185   :  { %v2781_v15 = vadd.f32 %v2765_v45, %v4320_v46 }
 0x186   :  { %v2782_v24 = vadd.f32 %v2766_v11, %v4326_v48 }
 0x187   :  { %2798 = vst.msk [vmem:[#allocation8 + $0x4] sm:$0x1] %vm2793_vm3, %v2781_v15 }
 0x188   :  { %2799 = vst.msk [vmem:[#allocation8 + $0x5] sm:$0x1] %vm2793_vm3, %v2782_v24 }
 0x192   :  { %v1912_v6 = vpop.f32.mrb[22].mxu0 }
 0x193   :  { %v2767_v34 = vmul.f32 %v1912_v6, %v1912_v6  ;;  %v1997_v25 = vpop.f32.mrb[22].mxu1  ;;  %v3336_v28 = vpop.f32.mrb[23].mxu0 }
 0x194   :  { %v2768_v47 = vmul.f32 %v1997_v25, %v1997_v25  ;;  %v3347_v29 = vpop.f32.mrb[23].mxu1 }
 0x195   :  { %v2783_v49 = vadd.f32 %v2767_v34, %v4332_v60 }
 0x196   :  { %v2784_v38 = vadd.f32 %v2768_v47, %v4338_v62 }
 0x197   :  { %2800 = vst.msk [vmem:[#allocation8 + $0x6] sm:$0x1] %vm2793_vm3, %v2783_v49 }
 0x198   :  { %2801 = vst.msk [vmem:[#allocation8 + $0x7] sm:$0x1] %vm2793_vm3, %v2784_v38 }
 0x1a2   :  { %v2082_v46 = vpop.f32.mrb[24].mxu0 }
 0x1a3   :  { %v2769_v48 = vmul.f32 %v2082_v46, %v2082_v46  ;;  %v2167_v5 = vpop.f32.mrb[24].mxu1  ;;  %v3358_v39 = vpop.f32.mrb[25].mxu0 }
 0x1a4   :  { %v2770_v9 = vmul.f32 %v2167_v5, %v2167_v5  ;;  %v3369_v12 = vpop.f32.mrb[25].mxu1 }
 0x1a5   :  { %v2785_v13 = vadd.f32 %v2769_v48, %v4344_v16 }
 0x1a6   :  { %v2786_v19 = vadd.f32 %v2770_v9, %v4350_v22 }
 0x1a7   :  { %2802 = vst.msk [vmem:[#allocation8 + $0x8] sm:$0x1] %vm2793_vm3, %v2785_v13 }
 0x1a8   :  { %2803 = vst.msk [vmem:[#allocation8 + $0x9] sm:$0x1] %vm2793_vm3, %v2786_v19 }
 0x1b2   :  { %v2252_v60 = vpop.f32.mrb[26].mxu0 }
 0x1b3   :  { %v2771_v62 = vmul.f32 %v2252_v60, %v2252_v60  ;;  %v2337_v50 = vpop.f32.mrb[26].mxu1  ;;  %v3380_v21 = vpop.f32.mrb[27].mxu0 }
 0x1b4   :  { %v2772_v54 = vmul.f32 %v2337_v50, %v2337_v50  ;;  %v3391_v18 = vpop.f32.mrb[27].mxu1 }
 0x1b5   :  { %v2787_v55 = vadd.f32 %v2771_v62, %v4356_v42 }
 0x1b6   :  { %v2788_v20 = vadd.f32 %v2772_v54, %v4362_v44 }
 0x1b7   :  { %2804 = vst.msk [vmem:[#allocation8 + $0xa] sm:$0x1] %vm2793_vm3, %v2787_v55 }
 0x1b8   :  { %2805 = vst.msk [vmem:[#allocation8 + $0xb] sm:$0x1] %vm2793_vm3, %v2788_v20 }
 0x1c2   :  { %v2422_v16 = vpop.f32.mrb[28].mxu0 }
 0x1c3   :  { %v2773_v22 = vmul.f32 %v2422_v16, %v2422_v16  ;;  %v2507_v26 = vpop.f32.mrb[28].mxu1  ;;  %v3402_v27 = vpop.f32.mrb[29].mxu0 }
 0x1c4   :  { %v2774_v0 = vmul.f32 %v2507_v26, %v2507_v26  ;;  %v3413_v1 = vpop.f32.mrb[29].mxu1 }
 0x1c5   :  { %v2789_v7 = vadd.f32 %v2773_v22, %v4368_v4 }
 0x1c6   :  { %v2790_v8 = vadd.f32 %v2774_v0, %v4374_v10 }
 0x1c7   :  { %2806 = vst.msk [vmem:[#allocation8 + $0xc] sm:$0x1] %vm2793_vm3, %v2789_v7 }
 0x1c8   :  { %2807 = vst.msk [vmem:[#allocation8 + $0xd] sm:$0x1] %vm2793_vm3, %v2790_v8 }
 0x1d2   :  { %v2592_v42 = vpop.f32.mrb[30].mxu0 }
 0x1d3   :  { %v2775_v44 = vmul.f32 %v2592_v42, %v2592_v42  ;;  %v2677_v33 = vpop.f32.mrb[30].mxu1  ;;  %v3424_v17 = vpop.f32.mrb[31].mxu0 }
 0x1d4   :  { %v2776_v61 = vmul.f32 %v2677_v33, %v2677_v33  ;;  %v3435_v23 = vpop.f32.mrb[31].mxu1 }
 0x1d5   :  { %v2791_v31 = vadd.f32 %v2775_v44, %v4380_v36 }
 0x1d6   :  { %v2792_v43 = vadd.f32 %v2776_v61, %v4382_v35 }
 0x1d7   :  { %2808 = vst.msk [vmem:[#allocation8 + $0xe] sm:$0x1] %vm2793_vm3, %v2791_v31 }
 0x1d8   :  { %2809 = vst.msk [vmem:[#allocation8 + $0xf] sm:$0x1] %vm2793_vm3, %v2792_v43 }
 0x1d9   :  { %3748 = shalt.err (!%p3745_p0)
}
 0x1da   :  { %s3749_s27 = scalar_lea.hbm %s4434_s3, 256 }
 0x1db   :  { %p3750_p1 = scmp.ne.s32.totalorder %s4434_s3, %s3749_s27  ;;  %p3753_p2 = scmp.lt.u32.totalorder %s3749_s27, %s4434_s3 }
 0x1dd   :  { %p3755_p3 = pnand %p3753_p2, %p3750_p1 }
 0x1df   :  { %3758 = shalt.err (!%p3755_p3)
}
 0x1e0   :  { %2821 = dma.vmem_to_hbm [thread:$0]  %s2816_s23, 256, %s4434_s3, [#allocation4], %s3769_s1, %s3769_s1, %s3770_s9  }
 0x1e1   :  { %3763 = dma.done.wait [#allocation4], 256  }
 0x1e2   :  { %3764 = vsyncadd [#allocation4], 4294967040 }
 0x1e3   :  { %2825 = vsyncpa [#allocation3], 1 }
 0x1e4   :  { %2826 = vsyncpa [#allocation6], 1 }
 0x1e5   :  { %2827 = vsyncpa [#allocation4], 1 }

</bundles_post_ra>
